<compile_context>
chip_gen: v7x
topology: tpu7x:2x2x1
jax: 0.10.0
libtpu: 0.0.40
codegen_flags: <defaults>
</compile_context>

<pallas_src>
import functools

import jax
import jax.numpy as jnp
import numpy as np
from jax import lax
from jax.experimental import pallas as pl
from jax.experimental.pallas import tpu as pltpu


def autopad(k, p=None, d=1):
    """Pad to 'same' shape outputs (mirrors the PyTorch helper)."""
    if d > 1:
        k = d * (k - 1) + 1 if isinstance(k, int) else [d * (x - 1) + 1 for x in k]
    if p is None:
        p = k // 2 if isinstance(k, int) else [x // 2 for x in k]
    return p


def _round_up(x, m):
    return ((x + m - 1) // m) * m


def _focus_conv_bn_silu_kernel(x_ref, w_ref, sb_ref, o_ref, *,
                               k, s, d, th, wout, band_h):
    """One (batch, row-tile) grid step: on-chip patch build + MXU matmuls + BN + SiLU."""
    h = pl.program_id(1)
    row0 = h * (th * s)
    if (th * s) % 8 == 0:
        row0 = pl.multiple_of(row0, 8)

    # Row band of the padded NHWC input covering this output row tile (bf16).
    band = x_ref[pl.ds(row0, band_h), :, :]              # (band_h, Wp, C4)
    c4 = x_ref.shape[-1]
    c2p = o_ref.shape[-1]

    acc = jnp.zeros((th * wout, c2p), jnp.float32)
    for ki in range(k):                                   # k*k unrolled at trace time
        for kj in range(k):
            xs = band[ki * d: ki * d + (th - 1) * s + 1: s,
                      kj * d: kj * d + (wout - 1) * s + 1: s, :]   # (th, wout, C4)
            acc = acc + jnp.dot(xs.reshape(th * wout, c4),
                                w_ref[ki * k + kj],
                                preferred_element_type=jnp.float32)

    scale = sb_ref[0:1, :]                                # (1, C2p) f32
    bias = sb_ref[1:2, :]
    y = acc * scale + bias                                # folded BN (running stats)
    y = y * jax.nn.sigmoid(y)                             # SiLU in f32
    o_ref[...] = y.reshape(th, wout, c2p).astype(o_ref.dtype)


def focus_pallas(x, w, gamma, beta, running_mean, running_var, *,
                 k=1, s=1, p=None, d=1, eps=1e-5,
                 compute_dtype=jnp.bfloat16, target_rows=1024):
    """Focus forward: space-to-depth + Conv(no bias) + BN(eval) + SiLU.  x is NCHW."""
    N, C1, H, W = x.shape
    assert H % 2 == 0 and W % 2 == 0, "Focus requires even spatial dims"
    C2 = w.shape[0]
    C4 = 4 * C1
    assert w.shape == (C2, C4, k, k)
    p = autopad(k, p, d)

    H2, W2 = H // 2, W // 2
    Hout = (H2 + 2 * p - d * (k - 1) - 1) // s + 1
    Wout = (W2 + 2 * p - d * (k - 1) - 1) // s + 1

    # --- Focus space-to-depth folded into one NHWC relayout -------------------
    # channel order matches torch.cat((x[::2,::2], x[1::2,::2], x[::2,1::2], x[1::2,1::2]), 1)
    # i.e. channel = (2*dx + dy) * C1 + c  with H = 2*h2+dy, W = 2*w2+dx.
    x_s2d = (x.reshape(N, C1, H2, 2, W2, 2)
              .transpose(0, 2, 4, 5, 3, 1)                # (N, H2, W2, dx, dy, C1)
              .reshape(N, H2, W2, C4))                    # NHWC, 4*C1 channels

    # --- row tiling / padding --------------------------------------------------
    th = max(1, min(Hout, max(1, target_rows // max(1, Wout))))
    n_h = (Hout + th - 1) // th
    band_h = (th - 1) * s + d * (k - 1) + 1
    hp = max(H2 + 2 * p, (n_h * th - 1) * s + d * (k - 1) + 1)   # keep tail tile in-bounds
    wp = W2 + 2 * p

    x_nhwc = jnp.pad(x_s2d, ((0, 0), (p, hp - H2 - p), (p, p), (0, 0))
                     ).astype(compute_dtype)              # bf16 MXU operand

    # --- weights / folded BN ---------------------------------------------------
    C2P = _round_up(C2, 128)                              # lane-dense output channels
    w_mat = w.transpose(2, 3, 1, 0).reshape(k * k, C4, C2)  # [(ki,kj), c, o]
    w_mat = jnp.pad(w_mat, ((0, 0), (0, 0), (0, C2P - C2))).astype(compute_dtype)

    inv_std = 1.0 / jnp.sqrt(running_var + eps)
    scale = gamma * inv_std
    bias = beta - running_mean * scale
    sb = jnp.stack([jnp.pad(scale, (0, C2P - C2)),
                    jnp.pad(bias, (0, C2P - C2))]).astype(jnp.float32)  # (2, C2P)

    out_dtype = x.dtype
    bpe = jnp.dtype(compute_dtype).itemsize
    obpe = jnp.dtype(out_dtype).itemsize

    # --- VMEM budget (double-buffered blocks + in-kernel temporaries) ----------
    vmem_est = (2 * hp * wp * C4 * bpe                     # input block (resident per n)
                + k * k * C4 * C2P * bpe                   # weights
                + 2 * C2P * 4                              # scale/bias
                + 2 * th * Wout * C2P * obpe               # output block
                + 2 * (band_h * wp * C4 * bpe + th * Wout * C2P * 4))  # temps
    vmem_limit = int(min(64 * 1024 * 1024, max(16 * 1024 * 1024, 2 * vmem_est)))

    cost = pl.CostEstimate(
        flops=2 * N * Hout * Wout * (C4 * k * k) * C2P,
        transcendentals=N * Hout * Wout * C2P,
        bytes_accessed=(x_nhwc.size * bpe + w_mat.size * bpe
                        + N * n_h * th * Wout * C2P * obpe),
    )

    kernel = functools.partial(_focus_conv_bn_silu_kernel,
                               k=k, s=s, d=d, th=th, wout=Wout, band_h=band_h)

    out = pl.pallas_call(
        kernel,
        out_shape=jax.ShapeDtypeStruct((N, n_h * th, Wout, C2P), out_dtype),
        grid_spec=pltpu.PrefetchScalarGridSpec(
            num_scalar_prefetch=0,
            grid=(N, n_h),
            in_specs=[
                # full padded NHWC image for batch n; constant across h -> stays resident
                pl.BlockSpec((None, hp, wp, C4), lambda n, h: (n, 0, 0, 0)),
                pl.BlockSpec((k * k, C4, C2P), lambda n, h: (0, 0, 0)),
                pl.BlockSpec((2, C2P), lambda n, h: (0, 0)),
            ],
            out_specs=pl.BlockSpec((None, th, Wout, C2P), lambda n, h: (n, h, 0, 0)),
        ),
        compiler_params=pltpu.CompilerParams(
            dimension_semantics=("parallel", "parallel"),
            vmem_limit_bytes=vmem_limit),
        cost_estimate=cost,
    )(x_nhwc, w_mat, sb)

    # back to PyTorch NCHW at the module boundary (a chained model would stay NHWC)
    return out[:, :Hout, :, :C2].transpose(0, 3, 1, 2)


def _reference(x, w, gamma, beta, mean, var, *, k, s, p, d, eps=1e-5,
               conv_dtype=jnp.float32):
    """Pure-JAX Focus reference (literal PyTorch concat order)."""
    xs2d = jnp.concatenate(
        [x[:, :, 0::2, 0::2], x[:, :, 1::2, 0::2],
         x[:, :, 0::2, 1::2], x[:, :, 1::2, 1::2]], axis=1)      # (N, 4C1, H/2, W/2)
    y = lax.conv_general_dilated(
        xs2d.astype(conv_dtype), w.astype(conv_dtype),
        window_strides=(s, s), padding=[(p, p), (p, p)],
        rhs_dilation=(d, d), dimension_numbers=("NCHW", "OIHW", "NCHW"),
        preferred_element_type=jnp.float32)
    scale = gamma / jnp.sqrt(var + eps)
    bias = beta - mean * scale
    y = y * scale[None, :, None, None] + bias[None, :, None, None]
    return y * jax.nn.sigmoid(y)


if __name__ == "__main__":
    # Focus(c1=4, c2=8, k=3, s=1) -> Conv(16, 8, k=3, s=1, p=autopad=1) + BN(eval) + SiLU
    N, C1, C2, H, W = 2, 4, 8, 16, 16
    k, s, d = 3, 1, 1
    p = autopad(k, None, d)

    key = jax.random.PRNGKey(0)
    kx, kw, kg, kb, km, kv = jax.random.split(key, 6)
    x = jax.random.normal(kx, (N, C1, H, W), dtype=jnp.float32)
    w = jax.random.normal(kw, (C2, 4 * C1, k, k), dtype=jnp.float32) * 0.1
    gamma = 1.0 + 0.1 * jax.random.normal(kg, (C2,), dtype=jnp.float32)
    beta = 0.1 * jax.random.normal(kb, (C2,), dtype=jnp.float32)
    running_mean = 0.1 * jax.random.normal(km, (C2,), dtype=jnp.float32)
    running_var = jax.random.uniform(kv, (C2,), dtype=jnp.float32,
                                     minval=0.5, maxval=1.5)

    out = focus_pallas(x, w, gamma, beta, running_mean, running_var,
                       k=k, s=s, p=None, d=d)
    out = jax.block_until_ready(out)

    # 1) reference with identical bf16 operand rounding + f32 accumulation (tight check)
    ref_bf16 = _reference(x, w, gamma, beta, running_mean, running_var,
                          k=k, s=s, p=p, d=d, conv_dtype=jnp.bfloat16)
    np.testing.assert_allclose(np.asarray(out), np.asarray(ref_bf16),
                               rtol=2e-3, atol=2e-3)

    # 2) full-f32 PyTorch-semantics reference (loose check for bf16 MXU operands)
    ref_f32 = _reference(x, w, gamma, beta, running_mean, running_var,
                         k=k, s=s, p=p, d=d, conv_dtype=jnp.float32)
    np.testing.assert_allclose(np.asarray(out), np.asarray(ref_f32),
                               rtol=5e-2, atol=5e-2)

    print("KERNEL_OK")
</pallas_src>

<mosaic_0001>
module attributes {stable_mosaic.version = 11 : i64} {
  func.func @_focus_conv_bn_silu_kernel(%arg0: i32, %arg1: i32, %arg2: memref<1x10x10x16xbf16, #tpu.memory_space<vmem>>, %arg3: memref<9x16x128xbf16, #tpu.memory_space<vmem>>, %arg4: memref<2x128xf32, #tpu.memory_space<vmem>>, %arg5: memref<1x8x8x128xf32, #tpu.memory_space<vmem>>) attributes {dimension_semantics = [#tpu.dimension_semantics<parallel>, #tpu.dimension_semantics<parallel>], iteration_bounds = array<i64: 2, 1>, scalar_prefetch = 0 : i64, scratch_operands = 0 : i64, tpu.core_type = #tpu.core_type<tc>, window_params = [{transform_indices = @transform_0, window_bounds = array<i64: 1, 10, 10, 16>}, {pipeline_mode = #tpu.pipeline_mode<synchronous>, transform_indices = @transform_1, window_bounds = array<i64: 9, 16, 128>}, {pipeline_mode = #tpu.pipeline_mode<synchronous>, transform_indices = @transform_2, window_bounds = array<i64: 2, 128>}, {transform_indices = @transform_3, window_bounds = array<i64: 1, 8, 8, 128>}]} {
    %c8_i32 = arith.constant 8 : i32
    %0 = arith.muli %arg1, %c8_i32 : i32
    %1 = tpu.assume_multiple %0, 8 : i32
    %c0 = arith.constant 0 : index
    %2 = arith.index_cast %1 : i32 to index
    %c0_0 = arith.constant 0 : index
    %c0_1 = arith.constant 0 : index
    %3 = vector.load %arg2[%c0, %2, %c0_0, %c0_1] : memref<1x10x10x16xbf16, #tpu.memory_space<vmem>>, vector<1x10x10x16xbf16>
    %4 = vector.shape_cast %3 : vector<1x10x10x16xbf16> to vector<10x10x16xbf16>
    %cst = arith.constant 0.000000e+00 : f32
    %5 = vector.broadcast %cst : f32 to vector<64x128xf32>
    %6 = vector.extract_strided_slice %4 {offsets = [0, 0, 0], sizes = [8, 8, 16], strides = [1, 1, 1]} : vector<10x10x16xbf16> to vector<8x8x16xbf16>
    %7 = vector.shape_cast %6 : vector<8x8x16xbf16> to vector<64x16xbf16>
    %c0_2 = arith.constant 0 : index
    %c0_3 = arith.constant 0 : index
    %c0_4 = arith.constant 0 : index
    %8 = vector.load %arg3[%c0_2, %c0_3, %c0_4] : memref<9x16x128xbf16, #tpu.memory_space<vmem>>, vector<1x16x128xbf16>
    %9 = vector.shape_cast %8 : vector<1x16x128xbf16> to vector<16x128xbf16>
    %cst_5 = arith.constant dense<0.000000e+00> : vector<64x128xf32>
    %10 = tpu.matmul %7, %9, %cst_5 {dimension_numbers = #tpu.dot_dimension_numbers<[1], [0], [0], [1], [0, 0, 1, 1], [], []>} : vector<64x16xbf16>, vector<16x128xbf16>, vector<64x128xf32> -> vector<64x128xf32>
    %11 = arith.addf %5, %10 : vector<64x128xf32>
    %12 = vector.extract_strided_slice %4 {offsets = [0, 1, 0], sizes = [8, 8, 16], strides = [1, 1, 1]} : vector<10x10x16xbf16> to vector<8x8x16xbf16>
    %13 = vector.shape_cast %12 : vector<8x8x16xbf16> to vector<64x16xbf16>
    %c1 = arith.constant 1 : index
    %c0_6 = arith.constant 0 : index
    %c0_7 = arith.constant 0 : index
    %14 = vector.load %arg3[%c1, %c0_6, %c0_7] : memref<9x16x128xbf16, #tpu.memory_space<vmem>>, vector<1x16x128xbf16>
    %15 = vector.shape_cast %14 : vector<1x16x128xbf16> to vector<16x128xbf16>
    %cst_8 = arith.constant dense<0.000000e+00> : vector<64x128xf32>
    %16 = tpu.matmul %13, %15, %cst_8 {dimension_numbers = #tpu.dot_dimension_numbers<[1], [0], [0], [1], [0, 0, 1, 1], [], []>} : vector<64x16xbf16>, vector<16x128xbf16>, vector<64x128xf32> -> vector<64x128xf32>
    %17 = arith.addf %11, %16 : vector<64x128xf32>
    %18 = vector.extract_strided_slice %4 {offsets = [0, 2, 0], sizes = [8, 8, 16], strides = [1, 1, 1]} : vector<10x10x16xbf16> to vector<8x8x16xbf16>
    %19 = vector.shape_cast %18 : vector<8x8x16xbf16> to vector<64x16xbf16>
    %c2 = arith.constant 2 : index
    %c0_9 = arith.constant 0 : index
    %c0_10 = arith.constant 0 : index
    %20 = vector.load %arg3[%c2, %c0_9, %c0_10] : memref<9x16x128xbf16, #tpu.memory_space<vmem>>, vector<1x16x128xbf16>
    %21 = vector.shape_cast %20 : vector<1x16x128xbf16> to vector<16x128xbf16>
    %cst_11 = arith.constant dense<0.000000e+00> : vector<64x128xf32>
    %22 = tpu.matmul %19, %21, %cst_11 {dimension_numbers = #tpu.dot_dimension_numbers<[1], [0], [0], [1], [0, 0, 1, 1], [], []>} : vector<64x16xbf16>, vector<16x128xbf16>, vector<64x128xf32> -> vector<64x128xf32>
    %23 = arith.addf %17, %22 : vector<64x128xf32>
    %24 = vector.extract_strided_slice %4 {offsets = [1, 0, 0], sizes = [8, 8, 16], strides = [1, 1, 1]} : vector<10x10x16xbf16> to vector<8x8x16xbf16>
    %25 = vector.shape_cast %24 : vector<8x8x16xbf16> to vector<64x16xbf16>
    %c3 = arith.constant 3 : index
    %c0_12 = arith.constant 0 : index
    %c0_13 = arith.constant 0 : index
    %26 = vector.load %arg3[%c3, %c0_12, %c0_13] : memref<9x16x128xbf16, #tpu.memory_space<vmem>>, vector<1x16x128xbf16>
    %27 = vector.shape_cast %26 : vector<1x16x128xbf16> to vector<16x128xbf16>
    %cst_14 = arith.constant dense<0.000000e+00> : vector<64x128xf32>
    %28 = tpu.matmul %25, %27, %cst_14 {dimension_numbers = #tpu.dot_dimension_numbers<[1], [0], [0], [1], [0, 0, 1, 1], [], []>} : vector<64x16xbf16>, vector<16x128xbf16>, vector<64x128xf32> -> vector<64x128xf32>
    %29 = arith.addf %23, %28 : vector<64x128xf32>
    %30 = vector.extract_strided_slice %4 {offsets = [1, 1, 0], sizes = [8, 8, 16], strides = [1, 1, 1]} : vector<10x10x16xbf16> to vector<8x8x16xbf16>
    %31 = vector.shape_cast %30 : vector<8x8x16xbf16> to vector<64x16xbf16>
    %c4 = arith.constant 4 : index
    %c0_15 = arith.constant 0 : index
    %c0_16 = arith.constant 0 : index
    %32 = vector.load %arg3[%c4, %c0_15, %c0_16] : memref<9x16x128xbf16, #tpu.memory_space<vmem>>, vector<1x16x128xbf16>
    %33 = vector.shape_cast %32 : vector<1x16x128xbf16> to vector<16x128xbf16>
    %cst_17 = arith.constant dense<0.000000e+00> : vector<64x128xf32>
    %34 = tpu.matmul %31, %33, %cst_17 {dimension_numbers = #tpu.dot_dimension_numbers<[1], [0], [0], [1], [0, 0, 1, 1], [], []>} : vector<64x16xbf16>, vector<16x128xbf16>, vector<64x128xf32> -> vector<64x128xf32>
    %35 = arith.addf %29, %34 : vector<64x128xf32>
    %36 = vector.extract_strided_slice %4 {offsets = [1, 2, 0], sizes = [8, 8, 16], strides = [1, 1, 1]} : vector<10x10x16xbf16> to vector<8x8x16xbf16>
    %37 = vector.shape_cast %36 : vector<8x8x16xbf16> to vector<64x16xbf16>
    %c5 = arith.constant 5 : index
    %c0_18 = arith.constant 0 : index
    %c0_19 = arith.constant 0 : index
    %38 = vector.load %arg3[%c5, %c0_18, %c0_19] : memref<9x16x128xbf16, #tpu.memory_space<vmem>>, vector<1x16x128xbf16>
    %39 = vector.shape_cast %38 : vector<1x16x128xbf16> to vector<16x128xbf16>
    %cst_20 = arith.constant dense<0.000000e+00> : vector<64x128xf32>
    %40 = tpu.matmul %37, %39, %cst_20 {dimension_numbers = #tpu.dot_dimension_numbers<[1], [0], [0], [1], [0, 0, 1, 1], [], []>} : vector<64x16xbf16>, vector<16x128xbf16>, vector<64x128xf32> -> vector<64x128xf32>
    %41 = arith.addf %35, %40 : vector<64x128xf32>
    %42 = vector.extract_strided_slice %4 {offsets = [2, 0, 0], sizes = [8, 8, 16], strides = [1, 1, 1]} : vector<10x10x16xbf16> to vector<8x8x16xbf16>
    %43 = vector.shape_cast %42 : vector<8x8x16xbf16> to vector<64x16xbf16>
    %c6 = arith.constant 6 : index
    %c0_21 = arith.constant 0 : index
    %c0_22 = arith.constant 0 : index
    %44 = vector.load %arg3[%c6, %c0_21, %c0_22] : memref<9x16x128xbf16, #tpu.memory_space<vmem>>, vector<1x16x128xbf16>
    %45 = vector.shape_cast %44 : vector<1x16x128xbf16> to vector<16x128xbf16>
    %cst_23 = arith.constant dense<0.000000e+00> : vector<64x128xf32>
    %46 = tpu.matmul %43, %45, %cst_23 {dimension_numbers = #tpu.dot_dimension_numbers<[1], [0], [0], [1], [0, 0, 1, 1], [], []>} : vector<64x16xbf16>, vector<16x128xbf16>, vector<64x128xf32> -> vector<64x128xf32>
    %47 = arith.addf %41, %46 : vector<64x128xf32>
    %48 = vector.extract_strided_slice %4 {offsets = [2, 1, 0], sizes = [8, 8, 16], strides = [1, 1, 1]} : vector<10x10x16xbf16> to vector<8x8x16xbf16>
    %49 = vector.shape_cast %48 : vector<8x8x16xbf16> to vector<64x16xbf16>
    %c7 = arith.constant 7 : index
    %c0_24 = arith.constant 0 : index
    %c0_25 = arith.constant 0 : index
    %50 = vector.load %arg3[%c7, %c0_24, %c0_25] : memref<9x16x128xbf16, #tpu.memory_space<vmem>>, vector<1x16x128xbf16>
    %51 = vector.shape_cast %50 : vector<1x16x128xbf16> to vector<16x128xbf16>
    %cst_26 = arith.constant dense<0.000000e+00> : vector<64x128xf32>
    %52 = tpu.matmul %49, %51, %cst_26 {dimension_numbers = #tpu.dot_dimension_numbers<[1], [0], [0], [1], [0, 0, 1, 1], [], []>} : vector<64x16xbf16>, vector<16x128xbf16>, vector<64x128xf32> -> vector<64x128xf32>
    %53 = arith.addf %47, %52 : vector<64x128xf32>
    %54 = vector.extract_strided_slice %4 {offsets = [2, 2, 0], sizes = [8, 8, 16], strides = [1, 1, 1]} : vector<10x10x16xbf16> to vector<8x8x16xbf16>
    %55 = vector.shape_cast %54 : vector<8x8x16xbf16> to vector<64x16xbf16>
    %c8 = arith.constant 8 : index
    %c0_27 = arith.constant 0 : index
    %c0_28 = arith.constant 0 : index
    %56 = vector.load %arg3[%c8, %c0_27, %c0_28] : memref<9x16x128xbf16, #tpu.memory_space<vmem>>, vector<1x16x128xbf16>
    %57 = vector.shape_cast %56 : vector<1x16x128xbf16> to vector<16x128xbf16>
    %cst_29 = arith.constant dense<0.000000e+00> : vector<64x128xf32>
    %58 = tpu.matmul %55, %57, %cst_29 {dimension_numbers = #tpu.dot_dimension_numbers<[1], [0], [0], [1], [0, 0, 1, 1], [], []>} : vector<64x16xbf16>, vector<16x128xbf16>, vector<64x128xf32> -> vector<64x128xf32>
    %59 = arith.addf %53, %58 : vector<64x128xf32>
    %c0_30 = arith.constant 0 : index
    %c0_31 = arith.constant 0 : index
    %60 = vector.load %arg4[%c0_30, %c0_31] : memref<2x128xf32, #tpu.memory_space<vmem>>, vector<1x128xf32>
    %c1_32 = arith.constant 1 : index
    %c0_33 = arith.constant 0 : index
    %61 = vector.load %arg4[%c1_32, %c0_33] : memref<2x128xf32, #tpu.memory_space<vmem>>, vector<1x128xf32>
    %62 = vector.broadcast %60 : vector<1x128xf32> to vector<64x128xf32>
    %63 = arith.mulf %59, %62 : vector<64x128xf32>
    %64 = vector.broadcast %61 : vector<1x128xf32> to vector<64x128xf32>
    %65 = arith.addf %63, %64 : vector<64x128xf32>
    %66 = arith.negf %65 : vector<64x128xf32>
    %67 = math.exp %66 : vector<64x128xf32>
    %cst_34 = arith.constant 1.000000e+00 : f32
    %68 = vector.broadcast %cst_34 : f32 to vector<64x128xf32>
    %69 = arith.addf %68, %67 : vector<64x128xf32>
    %70 = arith.divf %68, %69 : vector<64x128xf32>
    %71 = arith.mulf %65, %70 : vector<64x128xf32>
    %72 = vector.shape_cast %71 : vector<64x128xf32> to vector<8x8x128xf32>
    %c0_35 = arith.constant 0 : index
    %c0_36 = arith.constant 0 : index
    %c0_37 = arith.constant 0 : index
    %c0_38 = arith.constant 0 : index
    %73 = vector.load %arg5[%c0_35, %c0_36, %c0_37, %c0_38] : memref<1x8x8x128xf32, #tpu.memory_space<vmem>>, vector<1x8x8x128xf32>
    %74 = vector.shape_cast %73 : vector<1x8x8x128xf32> to vector<8x8x128xf32>
    %75 = vector.shape_cast %72 : vector<8x8x128xf32> to vector<1x8x8x128xf32>
    tpu.vector_store %arg5[%c0_35, %c0_36, %c0_37, %c0_38], %75 {strides = array<i32>} : memref<1x8x8x128xf32, #tpu.memory_space<vmem>>, vector<1x8x8x128xf32>,
    return
  }
  func.func @transform_0(%arg0: i32, %arg1: i32) -> (i32, i32, i32, i32) {
    %c0_i32 = arith.constant 0 : i32
    %c0_i32_0 = arith.constant 0 : i32
    %c0_i32_1 = arith.constant 0 : i32
    %c0_i32_2 = arith.constant 0 : i32
    return %arg0, %c0_i32, %c0_i32_0, %c0_i32_1 : i32, i32, i32, i32
  }
  func.func @transform_1(%arg0: i32, %arg1: i32) -> (i32, i32, i32) {
    %c0_i32 = arith.constant 0 : i32
    %c0_i32_0 = arith.constant 0 : i32
    %c0_i32_1 = arith.constant 0 : i32
    %c0_i32_2 = arith.constant 0 : i32
    return %c0_i32, %c0_i32_0, %c0_i32_1 : i32, i32, i32
  }
  func.func @transform_2(%arg0: i32, %arg1: i32) -> (i32, i32) {
    %c0_i32 = arith.constant 0 : i32
    %c0_i32_0 = arith.constant 0 : i32
    %c0_i32_1 = arith.constant 0 : i32
    return %c0_i32, %c0_i32_0 : i32, i32
  }
  func.func @transform_3(%arg0: i32, %arg1: i32) -> (i32, i32, i32, i32) {
    %c0_i32 = arith.constant 0 : i32
    %c0_i32_0 = arith.constant 0 : i32
    %c0_i32_1 = arith.constant 0 : i32
    return %arg0, %arg1, %c0_i32, %c0_i32_0 : i32, i32, i32, i32
  }
}

</mosaic_0001>

<bundles_post_ra>
// kernel: tpu_custom_call.1
= control target key start
LH: loop header
LB: loop body
LE: loop exit
PB: predicated region body
PF: predicated region fallthrough
CT: control target
= control target key end

     0   :  { %8 = vsyncpa [#allocation3], 0  ;;  %s2420_s0 = inlined_call_operand.vmem [shape: bf16[2,10,10,16], index: 0, kind: input, shape index: {}]   ;;  %s2421_s1 = inlined_call_operand.vmem [shape: bf16[9,16,128], index: 1, kind: input, shape index: {}]   ;;  %s2422_s2 = inlined_call_operand.vmem [shape: f32[2,128], index: 2, kind: input, shape index: {}]   ;;  %s2423_s3 = inlined_call_operand.hbm [shape: f32[2,8,8,128], index: 3, kind: output, shape index: {}]  }
   0x1   :  { %10 = vsyncpa [#allocation3 + $0x1], 0  ;;  %s1989_s12 = smov 0   ;;  %s1991_s13 = smov 0  }
   0x2   :  { %s1993_s14 = smov 0   ;;  %s1995_s15 = smov 0  }
   0x3   :  { %s1997_s16 = smov 0   ;;  %s1999_s17 = smov 0  }
   0x4 LB: > { %s1456_s18 = sadd.s32 4294967295, %s1964_s17   ;;  %s1457_s19 = sadd.s32 4294967294, %s1964_s17   ;;  %s1964_s17 = sphi %s1999_s17, %s16_s17   ;;  %s1960_s16 = sphi %s1997_s16, %s2434_s16   ;;  %s1956_s15 = sphi %s1995_s15, %s2433_s15   ;;  %s1952_s14 = sphi %s1993_s14, %s2432_s14   ;;  %s1948_s13 = sphi %s1991_s13, %s2431_s13   ;;  %s1944_s12 = sphi %s1989_s12, %s2430_s12  }
   0x5   : > { %s28_s20 = sadd.s32 1, %s1960_s16  ;;  %s105_s21 = sadd.s32 1, %s1952_s14 }
   0x6   : > { %p30_p0 = scmp.ge.s32.totalorder %s28_s20, 2  ;;  %p115_p1 = scmp.ne.s32.totalorder %s1952_s14, %s1948_s13 }
   0x7   : > { %p116_p2 = scmp.eq.s32.totalorder %s1456_s18, 1  ;;  %p121_p3 = scmp.ne.s32.totalorder %s1948_s13, %s1944_s12 }
   0x8   : > { %s2436_s20 = smov (%p30_p0, %s28_s20), 0  ;;  %p122_p5 = scmp.eq.s32.totalorder %s1457_s19, 1 }
   0x9   : > { %p2029_p4 = por %p116_p2, %p115_p1  ;;  %s100_s23 = ssub.s32 %s1960_s16, %s2436_s20 }
   0xa   : > { %p1460_p6 = scmp.ge.s32.totalorder %s1964_s17, 1  ;;  %p103_p7 = scmp.eq.s32.totalorder %s100_s23, 0 }
   0xb   : > { %p2036_p8 = por %p122_p5, %p121_p3  ;;  %p154_p9 = scmp.lt.s32.totalorder %s1964_s17, 3 }
   0xc   : > { %s2042_s25 = scalar_select %p103_p7, %s1952_s14, %s105_s21  }
   0xd   : > { %p155_p10 = pnand %p1460_p6, %p154_p9 }
   0xe   : > { %v1836_v0 = vld [vmem:[%s2421_s1 + $0x8] sm:$0xff] (!%p155_p10)   ;;  %p178_p11 = scmp.lt.s32.totalorder (!%p155_p10), %s1956_s15, 1  ;;  %v2051_v1 = vld [vmem:[%s2421_s1 + $0x20] sm:$0xff] (!%p155_p10)   ;;  %vm211_vm0 = vsmask.f32 (!%p155_p10), 3328  ;;  %vm347_vm2 = vcmask (!%p155_p10), 130048  }
   0xf   : > { %158 = sbr.rel (%p155_p10) target bundleno = 379 (0x17b), region = 32  ;;  %1622 = vmatprep.subr.bf16.mxu1 (!%p155_p10), %v1836_v0  ;;  %v2057_v2 = vld [vmem:[%s2421_s1] sm:$0xff] (!%p155_p10)   ;;  %1662 = vmatprep.subr.bf16.mxu0 (!%p155_p10), %v2051_v1  ;;  %v2065_v3 = vld [vmem:[%s2421_s1 + $0x28] sm:$0xff] (!%p155_p10)   ;;  %vm212_vm1 = vsmask.f32 (!%p155_p10), 7440  ;;  %vm536_vm4 = vcmask (!%p155_p10), 1042432  }
  0x10   : > { %1623 = vmatpush3.bf16.msra.mxu1 (!%p155_p10), %v1836_v0  ;;  %1663 = vmatpush3.bf16.msra.mxu0 (!%p155_p10), %v2051_v1  ;;  %vm2108_vm3 = vmor (!%p155_p10), %vm211_vm0, %vm212_vm1  ;;  %vm537_vm5 = vcmask (!%p155_p10), 1046532   ;;  %s175_s9 = sand.u32 (!%p155_p10), 1, %s1948_s13   ;;  %s1576_s18 = sshll.u32 (!%p155_p10), %s1956_s15, 10 }
  0x11   : > { %1632 = vmatprep.subr.bf16.mxu1 (!%p155_p10), %v2057_v2  ;;  %1672 = vmatprep.subr.bf16.mxu0 (!%p155_p10), %v2065_v3  ;;  %vm2179_vm6 = vmor (!%p155_p10), %vm536_vm4, %vm537_vm5  ;;  %s1461_s10 = sshll.u32 (!%p155_p10), %s175_s9, 6  ;;  %s2368_s26 = scalar_lea.hbm (!%p155_p10), %s2423_s3, %s1576_s18 }
  0x12   : > { %s1966_s28 = smov (!%p155_p10), [#allocation2]  }
  0x13   : > { %s1890_s29 = sshll.u32 (!%p155_p10), %s1966_s28, 4  ;;  %s1891_s29 = int_to_ptr.vmem [resolvable:$false] %s1890_s29 }
  0x16   : > { %s179_s30 = scalar_select %p178_p11, %s1956_s15, 1 }
  0x17   : > { %s2374_s15 = scalar_lea.sflag [#allocation3], %s175_s9 }
  0x18   : > { %s1778_s6 = smul.u32 80, %s179_s30  ;;  %s1892_s30 = scalar_lea.vmem %s1891_s29, 2048 }
  0x1a   : > { %s2070_s11 = scalar_lea.vmem %s2420_s0, %s1778_s6 }
  0x1b   : > { %v2074_v4 = vld [vmem:[%s2070_s11] sm:$0xf]  ;;  %v2077_v5 = vld [vmem:[%s2070_s11 + $0x4] sm:$0x1]  ;;  %v2080_v6 = vld [vmem:[%s2070_s11 + $0x8] sm:$0xf] }
  0x1c   : > { %v2083_v7 = vld [vmem:[%s2070_s11 + $0xc] sm:$0x1]  ;;  %v215_v8 = vshrl.u32 %v2074_v4, 16  ;;  %v218_v9 = vshll.u32 %v2074_v4, 16  ;;  %v224_v10 = vshll.u32 %v2077_v5, 16  ;;  %v229_v11 = vshrl.u32 %v2080_v6, 16 }
  0x1d   : > { %v232_v12 = vshll.u32 %v2080_v6, 16  ;;  %v238_v13 = vshll.u32 %v2083_v7, 16  ;;  %v2092_v14 = vld [vmem:[%s2070_s11 + $0x10] sm:$0xf]  ;;  %v545_v18 = vrot.slane %v2083_v7, 5  ;;  %v1474_v7 = vcombine.low %v2074_v4, %v2080_v6 }
  0x1e   : > { %v217_v15 = vrot.slane %v215_v8, 4  ;;  %v220_v16 = vrot.slane %v218_v9, 5  ;;  %v231_v17 = vrot.slane %v229_v11, 4  ;;  %v2096_v19 = vld [vmem:[%s2070_s11 + $0x14] sm:$0x1]  ;;  %v226_v20 = vrot.slane %v224_v10, 5 }
  0x1f   : > { %v234_v21 = vrot.slane %v232_v12, 5  ;;  %v2099_v22 = vld [vmem:[%s2070_s11 + $0x18] sm:$0xf]  ;;  %v2102_v23 = vld [vmem:[%s2070_s11 + $0x1c] sm:$0x1]  ;;  %v240_v25 = vrot.slane %v238_v13, 5 }
  0x20   : > { %v221_v24 = vor.u32 %v220_v16, %v217_v15  ;;  %v243_v26 = vshrl.u32 %v2092_v14, 16  ;;  %v246_v27 = vshll.u32 %v2092_v14, 16  ;;  %v2113_v30 = vld [vmem:[%s2070_s11 + $0x20] sm:$0xf]  ;;  %v252_v31 = vshll.u32 %v2096_v19, 16 }
  0x21   : > { %v235_v29 = vor.u32 %v234_v21, %v231_v17  ;;  %v257_v32 = vshrl.u32 %v2099_v22, 16  ;;  %v260_v33 = vshll.u32 %v2099_v22, 16  ;;  %v2119_v35 = vld [vmem:[%s2070_s11 + $0x24] sm:$0x1]  ;;  %v266_v38 = vshll.u32 %v2102_v23, 16 }
  0x22   : > { %v222_v34 = vrot.slane %v221_v24, 4  ;;  %v245_v36 = vrot.slane %v243_v26, 4  ;;  %v248_v37 = vrot.slane %v246_v27, 5  ;;  %v254_v40 = vrot.slane %v252_v31, 5  ;;  %v2126_v47 = vld [vmem:[%s2070_s11 + $0x28] sm:$0xf] }
  0x23   : > { %v236_v39 = vrot.slane %v235_v29, 4  ;;  %v259_v41 = vrot.slane %v257_v32, 4  ;;  %v262_v42 = vrot.slane %v260_v33, 5  ;;  %v268_v45 = vrot.slane %v266_v38, 5  ;;  %v2133_v52 = vld [vmem:[%s2070_s11 + $0x2c] sm:$0x1] }
  0x24   : > { %v227_v43 = vsel %vm2108_vm3, %v222_v34, %v226_v20  ;;  %v249_v44 = vor.u32 %v248_v37, %v245_v36  ;;  %v271_v46 = vshrl.u32 %v2113_v30, 16  ;;  %v274_v50 = vshll.u32 %v2113_v30, 16  ;;  %v2136_v53 = vld [vmem:[%s2070_s11 + $0x30] sm:$0xf]  ;;  %v2140_v58 = vld [vmem:[%s2070_s11 + $0x34] sm:$0x1] }
  0x25   : > { %v241_v48 = vsel %vm2108_vm3, %v236_v39, %v240_v25  ;;  %v263_v49 = vor.u32 %v262_v42, %v259_v41  ;;  %v280_v51 = vshll.u32 %v2119_v35, 16  ;;  %v549_v57 = vrot.slane %v2096_v19, 5  ;;  %v2144_v63 = vld [vmem:[%s2070_s11 + $0x38] sm:$0xf]  ;;  %v2158_v20 = vld [vmem:[%s2070_s11 + $0x3c] sm:$0x1] }
  0x26   : > { %v1465_v54 = vcombine.low %v227_v43, %v241_v48  ;;  %v250_v55 = vrot.slane %v249_v44, 4  ;;  %v273_v56 = vrot.slane %v271_v46, 4  ;;  %v276_v60 = vrot.slane %v274_v50, 5  ;;  %v2164_v24 = vld [vmem:[%s2421_s1 + $0x10] sm:$0xff]  }
  0x27   : > { %v264_v59 = vrot.slane %v263_v49, 4  ;;  %v282_v61 = vrot.slane %v280_v51, 5  ;;  %v553_v62 = vrot.slane %v2102_v23, 5  ;;  %v557_v8 = vrot.slane %v2119_v35, 5 }
  0x28   : > { %1624 = vmatprep.mubr.msk.bf16.mxu1 %vm347_vm2, %v1465_v54  ;;  %v255_v0 = vsel %vm2108_vm3, %v250_v55, %v254_v40  ;;  %v285_v9 = vshrl.u32 %v2126_v47, 16  ;;  %v288_v10 = vshll.u32 %v2126_v47, 16  ;;  %v277_v12 = vor.u32 %v276_v60, %v273_v56 }
  0x29   : > { %v269_v11 = vsel %vm2108_vm3, %v264_v59, %v268_v45  ;;  %v1515_v13 = vcombine.low %v241_v48, %v255_v0  ;;  %v294_v15 = vshll.u32 %v2133_v52, 16  ;;  %v299_v21 = vshrl.u32 %v2136_v53, 16  ;;  %v1840_v45 = vld [vmem:[%s2421_s1 + $0x30] sm:$0xff]  }
  0x2a   : > { %v2155_v16 = vcombine.low %v255_v0, %v269_v11  ;;  %v287_v17 = vrot.slane %v285_v9, 4  ;;  %v290_v19 = vrot.slane %v288_v10, 5  ;;  %v278_v25 = vrot.slane %v277_v12, 4 }
  0x2b   : > { %1664 = vmatprep.mubr.msk.bf16.mxu0 %vm347_vm2, %v1515_v13  ;;  %v296_v26 = vrot.slane %v294_v15, 5  ;;  %v302_v27 = vshll.u32 %v2136_v53, 16  ;;  %v308_v29 = vshll.u32 %v2140_v58, 16  ;;  %v301_v32 = vrot.slane %v299_v21, 4  ;;  %v2243_v21 = vld [vmem:[%s2070_s11 + $0x44] sm:$0x1] }
  0x2c   : > { %1625 = vmatmul.mubr.msk.bf16.vlgmr.msra.gmra.mrb[0].mxu1 %vm347_vm2, %v2155_v16  ;;  %v291_v31 = vor.u32 %v290_v19, %v287_v17  ;;  %v313_v33 = vshrl.u32 %v2144_v63, 16  ;;  %v316_v34 = vshll.u32 %v2144_v63, 16  ;;  %v283_v36 = vsel %vm2108_vm3, %v278_v25, %v282_v61  ;;  %v2240_v19 = vld [vmem:[%s2070_s11 + $0x40] sm:$0xf] }
  0x2d   : > { %1633 = vmatpush3.bf16.msra.mxu1 %v2057_v2  ;;  %v304_v37 = vrot.slane %v302_v27, 5  ;;  %v310_v38 = vrot.slane %v308_v29, 5  ;;  %v322_v39 = vshll.u32 %v2158_v20, 16  ;;  %v1516_v40 = vcombine.low %v269_v11, %v283_v36  ;;  %v1846_v27 = vld [vmem:[%s2421_s1 + $0x38] sm:$0xff]  }
  0x2e   : > { %v292_v41 = vrot.slane %v291_v31, 4  ;;  %v315_v42 = vrot.slane %v313_v33, 4  ;;  %v318_v43 = vrot.slane %v316_v34, 5  ;;  %1642 = vmatprep.subr.bf16.mxu1 %v2164_v24  ;;  %v1484_v48 = vrot.slane %v2080_v6, 9 }
  0x2f   : > { %v305_v2 = vor.u32 %v304_v37, %v301_v32  ;;  %v324_v46 = vrot.slane %v322_v39, 5  ;;  %v1485_v49 = vrot.slane %v2092_v14, 9  ;;  %1665 = vmatmul.mubr.msk.bf16.vlgmr.msra.gmra.mrb[0].mxu0 %vm347_vm2, %v1516_v40  ;;  %v1486_v54 = vrot.slane %v2099_v22, 9  ;;  %v208_v37 = vld [vmem:[%s2070_s11 + $0x4c] sm:$0x1] }
  0x30   : > { %v2192_v50 = vsel %vm2108_vm3, %v292_v41, %v296_v26  ;;  %v319_v51 = vor.u32 %v318_v43, %v315_v42  ;;  %v1487_v55 = vrot.slane %v2113_v30, 9  ;;  %1673 = vmatpush3.bf16.msra.mxu0 %v2065_v3  ;;  %v546_v60 = vsel %vm2179_vm6, %v1484_v48, %v545_v18 }
  0x31   : > { %v2198_v56 = vcombine.low %v283_v36, %v2192_v50  ;;  %v306_v59 = vrot.slane %v305_v2, 4  ;;  %v550_v61 = vsel %vm2179_vm6, %v1485_v49, %v549_v57  ;;  %1682 = vmatprep.subr.bf16.mxu0 %v1840_v45  ;;  %v1488_v18 = vrot.slane %v2126_v47, 9  ;;  %v207_v36 = vld [vmem:[%s2070_s11 + $0x48] sm:$0xf]  ;;  %s177_s11 = scalar_lea.vmem [#allocation2], %s1461_s10 }
  0x32   : > { %v320_v0 = vrot.slane %v319_v51, 4  ;;  %v1527_v9 = vcombine.low %v546_v60, %v550_v61  ;;  %v561_v10 = vrot.slane %v2133_v52, 5  ;;  %v1489_v11 = vrot.slane %v2136_v53, 9  ;;  %s1381_s19 = sshll.u32 %s177_s11, 4  ;;  %s2370_s19 = int_to_ptr.vmem [resolvable:$true] %s1381_s19 }
  0x33   : > { %1628 = vmatprep.mubr.msk.bf16.mxu1 %vm347_vm2, %v2198_v56  ;;  %v2210_v3 = vsel %vm2108_vm3, %v306_v59, %v310_v38  ;;  %v565_v12 = vrot.slane %v2140_v58, 5  ;;  %v554_v15 = vsel %vm2179_vm6, %v1486_v54, %v553_v62  ;;  %v558_v17 = vsel %vm2179_vm6, %v1487_v55, %v557_v8  ;;  %s1886_s27 = scalar_lea.vmem %s2370_s19, 1024  ;;  %p1893_p1 = scmp.lt.s32.totalorder %s2370_s19, %s1891_s29 }
  0x34   : > { %v2217_v57 = vsel %vm2108_vm3, %v320_v0, %v324_v46  ;;  %1674 = vmatprep.mubr.msk.bf16.mxu0 %vm347_vm2, %v1527_v9  ;;  %v562_v52 = vsel %vm2179_vm6, %v1488_v18, %v561_v10  ;;  %v1528_v23 = vcombine.low %v554_v15, %v558_v17  ;;  %v1490_v35 = vrot.slane %v2144_v63, 9  ;;  %p1887_p12 = scmp.ne.s32.totalorder %s2370_s19, %s1886_s27  ;;  %p1894_p2 = scmp.lt.s32.totalorder %s1892_s30, %s1886_s27 }
  0x35   : > { %v2225_v13 = vcombine.low %v2210_v3, %v2217_v57  ;;  %v566_v58 = vsel %vm2179_vm6, %v1489_v11, %v565_v12  ;;  %v569_v8 = vrot.slane %v2158_v20, 5  ;;  %v1524_v25 = vrot.slane %v2240_v19, 9 }
  0x36   : > { %v1529_v62 = vcombine.low %v562_v52, %v566_v58  ;;  %v893_v26 = vrot.slane %v2243_v21, 5  ;;  %v1475_v29 = vcombine.low %v2092_v14, %v2099_v22  ;;  %v541_v31 = vrot.slane %v2077_v5, 5  ;;  %v1847_v5 = vld [vmem:[%s2421_s1 + $0x18] sm:$0xff]   ;;  %p1888_p13 = pnand %p1887_p12, %p2029_p4  ;;  %p1895_p3 = por %p1894_p2, %p1893_p1 }
  0x37   : > { %1629 = vmatmul.mubr.msk.bf16.gmra.mrb[4].mxu1 %vm347_vm2, %v2225_v13  ;;  %v1476_v32 = vcombine.low %v2113_v30, %v2126_v47  ;;  %v570_v20 = vsel %vm2179_vm6, %v1490_v35, %v569_v8  ;;  %v1483_v34 = vrot.slane %v2074_v4, 9  ;;  %v1552_v38 = vrot.slane %v207_v36, 9 }
  0x38   : > { %1634 = vmatprep.mubr.msk.bf16.mxu1 %vm347_vm2, %v1474_v7  ;;  %v2266_v33 = vsel %vm2179_vm6, %v1524_v25, %v893_v26  ;;  %v1186_v39 = vrot.slane %v208_v37, 5  ;;  %v1477_v42 = vcombine.low %v2136_v53, %v2144_v63  ;;  %v1495_v44 = vcombine.low %v558_v17, %v562_v52  ;;  %p1889_p0 = pneg %p1888_p13 }
  0x39   : > { %v1530_v40 = vcombine.low %v570_v20, %v2266_v33  ;;  %v542_v41 = vsel %vm2179_vm6, %v1483_v34, %v541_v31  ;;  %v1083_v2 = vshrl.u32 %v207_v36, 16  ;;  %v1086_v46 = vshll.u32 %v207_v36, 16 }
  0x3a   : > { %v2280_v4 = vsel %vm2179_vm6, %v1552_v38, %v1186_v39  ;;  %v1493_v43 = vcombine.low %v542_v41, %v546_v60  ;;  %v778_v48 = vshrl.u32 %v2240_v19, 16  ;;  %v781_v49 = vshll.u32 %v2240_v19, 16  ;;  %p1896_p5 = pnand %p1895_p3, %p1889_p0 }
  0x3b   : > { %1675 = vmatmul.mubr.msk.bf16.vlgmr.msra.gmra.mrb[0].mxu0 %vm347_vm2, %v1528_v23  ;;  %v1538_v51 = vcombine.low %v2240_v19, %v207_v36  ;;  %v1085_v59 = vrot.slane %v1083_v2, 4  ;;  %v1088_v60 = vrot.slane %v1086_v46, 5  ;;  %v1504_v0 = vcombine.low %v2080_v6, %v2092_v14 }
  0x3c   : > { %1683 = vmatpush3.bf16.msra.mxu0 %v1840_v45  ;;  %1678 = vmatprep.mubr.msk.bf16.mxu0 %vm347_vm2, %v1529_v62  ;;  %v1494_v45 = vcombine.low %v550_v61, %v554_v15  ;;  %v780_v54 = vrot.slane %v778_v48, 4  ;;  %v783_v55 = vrot.slane %v781_v49, 5  ;;  %v1496_v61 = vcombine.low %v566_v58, %v570_v20 }
  0x3d   : > { %1692 = vmatprep.subr.bf16.mxu0 %v1846_v27  ;;  %v787_v7 = vshll.u32 %v2243_v21, 16  ;;  %v1089_v18 = vor.u32 %v1088_v60, %v1085_v59  ;;  %v1092_v10 = vshll.u32 %v208_v37, 16  ;;  %v1505_v52 = vcombine.low %v2099_v22, %v2113_v30 }
  0x3e   : > { %v784_v9 = vor.u32 %v783_v55, %v780_v54  ;;  %v1506_v6 = vcombine.low %v2126_v47, %v2136_v53  ;;  %v1507_v30 = vcombine.low %v2144_v63, %v2240_v19  ;;  %v1517_v47 = vcombine.low %v2192_v50, %v2210_v3 }
  0x3f   : > { %1635 = vmatmul.mubr.msk.bf16.vlgmr.msra.gmra.mrb[0].mxu1 %vm347_vm2, %v1475_v29  ;;  %v789_v12 = vrot.slane %v787_v7, 5  ;;  %v1090_v15 = vrot.slane %v1089_v18, 4  ;;  %v1094_v17 = vrot.slane %v1092_v10, 5  ;;  %v1555_v28 = vcombine.low %v2266_v33, %v2280_v4 }
  0x40   : > { %1643 = vmatpush3.bf16.msra.mxu1 %v2164_v24  ;;  %1638 = vmatprep.mubr.msk.bf16.mxu1 %vm347_vm2, %v1476_v32  ;;  %v1849_v24 = vld [vmem:[%s2421_s1 + $0x40] sm:$0xff]   ;;  %v785_v11 = vrot.slane %v784_v9, 4 }
  0x41   : > { %1652 = vmatprep.subr.bf16.mxu1 %v1847_v5 }
  0x42   : > { %v790_v14 = vsel %vm2108_vm3, %v785_v11, %v789_v12 }
  0x43   : > { %1679 = vmatmul.mubr.msk.bf16.gmra.mrb[4].mxu0 %vm347_vm2, %v1530_v40 }
  0x44   : > { %1684 = vmatprep.mubr.msk.bf16.mxu0 %vm347_vm2, %v1475_v29 }
  0x47   : > { %1639 = vmatmul.mubr.msk.bf16.gmra.mrb[4].mxu1 %vm347_vm2, %v1477_v42 }
  0x48   : > { %1644 = vmatprep.mubr.msk.bf16.mxu1 %vm347_vm2, %v1493_v43 }
  0x4b   : > { %1685 = vmatmul.mubr.msk.bf16.vlgmr.msra.gmra.mrb[0].mxu0 %vm347_vm2, %v1476_v32 }
  0x4c   : > { %1693 = vmatpush3.bf16.msra.mxu0 %v1846_v27  ;;  %1688 = vmatprep.mubr.msk.bf16.mxu0 %vm347_vm2, %v1477_v42 }
  0x4d   : > { %1702 = vmatprep.subr.bf16.mxu0 %v1849_v24 }
  0x4f   : > { %1645 = vmatmul.mubr.msk.bf16.vlgmr.msra.gmra.mrb[0].mxu1 %vm347_vm2, %v1494_v45 }
  0x50   : > { %1653 = vmatpush3.bf16.msra.mxu1 %v1847_v5  ;;  %1648 = vmatprep.mubr.msk.bf16.mxu1 %vm347_vm2, %v1495_v44 }
  0x51   : > { %1712 = vmatprep.subr.bf16.mxu1 %v2051_v1 }
  0x53   : > { %1689 = vmatmul.mubr.msk.bf16.gmra.mrb[4].mxu0 %vm347_vm2, %v1538_v51 }
  0x54   : > { %1694 = vmatprep.mubr.msk.bf16.mxu0 %vm347_vm2, %v2155_v16  ;;  %v1095_v16 = vsel %vm2108_vm3, %v1090_v15, %v1094_v17 }
  0x55   : > { %v1546_v22 = vcombine.low %v790_v14, %v1095_v16 }
  0x57   : > { %1649 = vmatmul.mubr.msk.bf16.gmra.mrb[4].mxu1 %vm347_vm2, %v1496_v61 }
  0x58   : > { %1654 = vmatprep.mubr.msk.bf16.mxu1 %vm347_vm2, %v1504_v0 }
  0x5b   : > { %1695 = vmatmul.mubr.msk.bf16.vlgmr.msra.gmra.mrb[0].mxu0 %vm347_vm2, %v2198_v56 }
  0x5c   : > { %1703 = vmatpush3.bf16.msra.mxu0 %v1849_v24  ;;  %1698 = vmatprep.mubr.msk.bf16.mxu0 %vm347_vm2, %v2225_v13  ;;  %v1561_v13 = vld [vmem:[%s2422_s2] ss:$0 sm:$0xff] }
  0x5f   : > { %1655 = vmatmul.mubr.msk.bf16.vlgmr.msra.gmra.mrb[0].mxu1 %vm347_vm2, %v1505_v52 }
  0x60   : > { %1713 = vmatpush3.bf16.msra.mxu1 %v2051_v1  ;;  %1658 = vmatprep.mubr.msk.bf16.mxu1 %vm347_vm2, %v1506_v6  ;;  %v1518_v1 = vcombine.low %v2217_v57, %v790_v14  ;;  %v1562_v57 = vld [vmem:[%s2422_s2 + $0x1] ss:$0 sm:$0xff] }
  0x63   : > { %1699 = vmatmul.mubr.msk.bf16.gmra.mrb[4].mxu0 %vm347_vm2, %v1546_v22 }
  0x64   : > { %1704 = vmatprep.mubr.msk.bf16.mxu0 %vm347_vm2, %v1494_v45 }
  0x67   : > { %1659 = vmatmul.mubr.msk.bf16.gmra.mrb[4].mxu1 %vm347_vm2, %v1507_v30 }
  0x68   : > { %1668 = vmatprep.mubr.msk.bf16.mxu1 %vm347_vm2, %v1517_v47 }
  0x6b   : > { %1705 = vmatmul.mubr.msk.bf16.vlgmr.msra.gmra.mrb[0].mxu0 %vm347_vm2, %v1495_v44 }
  0x6c   : > { %1708 = vmatprep.mubr.msk.bf16.mxu0 %vm347_vm2, %v1496_v61 }
  0x73   : > { %1669 = vmatmul.mubr.msk.bf16.vlgmr.msra.gmra.mrb[4].mxu1 %vm347_vm2, %v1518_v1  ;;  %1709 = vmatmul.mubr.msk.bf16.gmra.mrb[4].mxu0 %vm347_vm2, %v1555_v28 }
 0x132   : > { %v1656_v53 = vpop.f32.mrb[0].mxu1 }
 0x133   : > { %v738_v63 = vpop.f32.mrb[1].mxu1 }
 0x134   : > { %v1657_v50 = vpop.f32.mrb[2].mxu1 }
 0x135   : > { %v741_v56 = vpop.f32.mrb[3].mxu1 }
 0x13e   : > { %v1706_v3 = vpop.f32.mrb[0].mxu0 }
 0x13f   : > { %v1714_v58 = vadd.f32 %v1706_v3, %v1656_v53  ;;  %v1236_v19 = vpop.f32.mrb[1].mxu0 }
 0x140   : > { %v1715_v21 = vadd.f32 %v1236_v19, %v738_v63  ;;  %v1707_v23 = vpop.f32.mrb[2].mxu0 }
 0x141   : > { %v1283_v35 = vmul.f32 %v1714_v58, %v1561_v13  ;;  %v1716_v62 = vadd.f32 %v1707_v23, %v1657_v50  ;;  %v1239_v8 = vpop.f32.mrb[3].mxu0 }
 0x142   : > { %v1281_v25 = vmul.f32 %v1715_v21, %v1561_v13  ;;  %v1717_v26 = vadd.f32 %v1239_v8, %v741_v56 }
 0x143   : > { %v2345_v27 = vadd.f32 %v1562_v57, %v1283_v35  ;;  %v1284_v29 = vmul.f32 %v1716_v62, %v1561_v13 }
 0x144   : > { %v2347_v31 = vadd.f32 %v1562_v57, %v1281_v25  ;;  %v1282_v32 = vmul.f32 %v1717_v26, %v1561_v13 }
 0x145   : > { %v1565_v20 = vmul.f32 -1.442695, %v2345_v27  ;;  %v2350_v33 = vadd.f32 %v1562_v57, %v1284_v29 }
 0x146   : > { %v1670_v34 = vpop.f32.mrb[4].mxu1  ;;  %v1563_v5 = vmul.f32 -1.442695, %v2347_v31  ;;  %v2353_v36 = vadd.f32 %v1562_v57, %v1282_v32  ;;  %v1710_v37 = vpop.f32.mrb[4].mxu0 }
 0x147   : > { %v867_v38 = vpop.f32.mrb[5].mxu1  ;;  %1854 = vpow2.f32 %v1565_v20  ;;  %v1566_v39 = vmul.f32 -1.442695, %v2350_v33  ;;  %v1718_v40 = vadd.f32 %v1710_v37, %v1670_v34  ;;  %v1252_v4 = vpop.f32.mrb[5].mxu0 }
 0x148   : > { %v1671_v41 = vpop.f32.mrb[6].mxu1  ;;  %1856 = vpow2.f32 %v1563_v5  ;;  %v1564_v42 = vmul.f32 -1.442695, %v2353_v36  ;;  %v1719_v43 = vadd.f32 %v1252_v4, %v867_v38  ;;  %v1711_v24 = vpop.f32.mrb[6].mxu0 }
 0x149   : > { %v870_v45 = vpop.f32.mrb[7].mxu1  ;;  %1858 = vpow2.f32 %v1566_v39  ;;  %v1287_v44 = vmul.f32 %v1718_v40, %v1561_v13  ;;  %v1720_v2 = vadd.f32 %v1711_v24, %v1671_v41  ;;  %v1255_v46 = vpop.f32.mrb[7].mxu0 }
 0x14a   : > { %1860 = vpow2.f32 %v1564_v42  ;;  %v1285_v48 = vmul.f32 %v1719_v43, %v1561_v13  ;;  %v1721_v49 = vadd.f32 %v1255_v46, %v870_v45 }
 0x14b   : > { %v1299_v51 = vadd.f32 %v1562_v57, %v1287_v44  ;;  %v1288_v54 = vmul.f32 %v1720_v2, %v1561_v13 }
 0x14c   : > { %v1297_v55 = vadd.f32 %v1562_v57, %v1285_v48  ;;  %v1286_v59 = vmul.f32 %v1721_v49, %v1561_v13 }
 0x14d   : > { %v1569_v60 = vmul.f32 -1.442695, %v1299_v51  ;;  %v1300_v61 = vadd.f32 %v1562_v57, %v1288_v54 }
 0x14e   : > { %v1567_v0 = vmul.f32 -1.442695, %v1297_v55  ;;  %v1298_v9 = vadd.f32 %v1562_v57, %v1286_v59 }
 0x14f   : > { %1862 = vpow2.f32 %v1569_v60  ;;  %v1570_v7 = vmul.f32 -1.442695, %v1300_v61 }
 0x150   : > { %1864 = vpow2.f32 %v1567_v0  ;;  %v1568_v18 = vmul.f32 -1.442695, %v1298_v9 }
 0x151   : > { %v1855_v10 = vpop.eup %1854  ;;  %1866 = vpow2.f32 %v1570_v7 }
 0x152   : > { %v1857_v11 = vpop.eup %1856  ;;  %v1327_v12 = vadd.f32 1.0, %v1855_v10  ;;  %1868 = vpow2.f32 %v1568_v18 }
 0x153   : > { %v1859_v15 = vpop.eup %1858  ;;  %v1325_v17 = vadd.f32 1.0, %v1857_v11 }
 0x154   : > { %v1861_v52 = vpop.eup %1860  ;;  %1870 = vrcp.f32 %v1327_v12  ;;  %v1328_v6 = vadd.f32 1.0, %v1859_v15 }
 0x155   : > { %1872 = vrcp.f32 %v1325_v17  ;;  %v1326_v14 = vadd.f32 1.0, %v1861_v52 }
 0x156   : > { %1874 = vrcp.f32 %v1328_v6 }
 0x157   : > { %1876 = vrcp.f32 %v1326_v14 }
 0x159   : > { %v1863_v16 = vpop.eup %1862 }
 0x15a   : > { %v1865_v22 = vpop.eup %1864  ;;  %v1331_v30 = vadd.f32 1.0, %v1863_v16 }
 0x15b   : > { %v1867_v47 = vpop.eup %1866  ;;  %v1329_v1 = vadd.f32 1.0, %v1865_v22 }
 0x15c   : > { %v1869_v28 = vpop.eup %1868  ;;  %1878 = vrcp.f32 %v1331_v30  ;;  %v1332_v53 = vadd.f32 1.0, %v1867_v47 }
 0x15d   : > { %1880 = vrcp.f32 %v1329_v1  ;;  %v1330_v63 = vadd.f32 1.0, %v1869_v28 }
 0x15e   : > { %v1871_v50 = vpop.eup %1870  ;;  %1882 = vrcp.f32 %v1332_v53 }
 0x15f   : > { %v1873_v56 = vpop.eup %1872  ;;  %v1351_v3 = vmul.f32 %v1871_v50, %v2345_v27  ;;  %1884 = vrcp.f32 %v1330_v63 }
 0x160   : > { %v1875_v13 = vpop.eup %1874  ;;  %v1349_v58 = vmul.f32 %v1873_v56, %v2347_v31 }
 0x161   : > { %v1877_v19 = vpop.eup %1876  ;;  %1359 = vst [vmem:[%s177_s11 + $0x10] sm:$0xff] %v1351_v3  ;;  %v1352_v57 = vmul.f32 %v1875_v13, %v2350_v33 }
 0x162   : > { %1357 = vst [vmem:[%s177_s11] sm:$0xff] %v1349_v58  ;;  %v1350_v21 = vmul.f32 %v1877_v19, %v2353_v36 }
 0x163   : > { %1360 = vst [vmem:[%s177_s11 + $0x18] sm:$0xff] %v1352_v57 }
 0x164   : > { %1358 = vst [vmem:[%s177_s11 + $0x8] sm:$0xff] %v1350_v21 }
 0x166   : > { %v1879_v23 = vpop.eup %1878 }
 0x167   : > { %v1881_v35 = vpop.eup %1880  ;;  %v1355_v62 = vmul.f32 %v1879_v23, %v1299_v51 }
 0x168   : > { %v1883_v8 = vpop.eup %1882  ;;  %v1353_v25 = vmul.f32 %v1881_v35, %v1297_v55 }
 0x169   : > { %v1885_v26 = vpop.eup %1884  ;;  %1363 = vst [vmem:[%s177_s11 + $0x30] sm:$0xff] %v1355_v62  ;;  %v1356_v27 = vmul.f32 %v1883_v8, %v1300_v61 }
 0x16a   : > { %1361 = vst [vmem:[%s177_s11 + $0x20] sm:$0xff] %v1353_v25  ;;  %v1354_v29 = vmul.f32 %v1885_v26, %v1298_v9 }
 0x16b   : > { %1364 = vst [vmem:[%s177_s11 + $0x38] sm:$0xff] %v1356_v27 }
 0x16c   : > { %1362 = vst [vmem:[%s177_s11 + $0x28] sm:$0xff] %v1354_v29 }
 0x16d   : > { %1899 = shalt.err (!%p1896_p5)
}
 0x16e   : > { %s1900_s4 = scalar_lea.hbm %s2368_s26, 1024  ;;  %s1904_s7 = scalar_lea.hbm %s2423_s3, 2048 }
 0x16f   : > { %p1901_p6 = scmp.ne.s32.totalorder %s2368_s26, %s1900_s4  ;;  %p1905_p10 = scmp.lt.u32.totalorder %s2368_s26, %s2423_s3 }
 0x170   : > { %p1906_p11 = scmp.lt.u32.totalorder %s1904_s7, %s1900_s4  ;;  %p1908_p13 = scmp.lt.u32.totalorder %s1900_s4, %s2368_s26 }
 0x171   : > { %p1902_p7 = pnand %p1901_p6, %p2029_p4 }
 0x172   : > { %p1907_p12 = por %p1906_p11, %p1905_p10 }
 0x173   : > { %p1903_p9 = pneg %p1902_p7 }
 0x174   : > { %p1909_p0 = por %p1908_p13, %p1907_p12 }
 0x176   : > { %p1910_p1 = pnand %p1909_p0, %p1903_p9 }
 0x178   : > { %1913 = shalt.err (!%p1910_p1)
}
 0x179   : > { %s1967_s10 = smov 128   ;;  %s1968_s11 = smov 8  }
 0x17a   : > { %1779 = dma.vmem_to_hbm [thread:$0]  (%p2029_p4), %s2370_s19, 1024, %s2368_s26, %s2374_s15, %s1967_s10, %s1967_s10, %s1968_s11  }
 0x17b PF: > { %p1785_p2 = scmp.ge.s32.totalorder %s1964_s17, 2  ;;  %s1396_s18 = sand.u32 1, %s1944_s12  }
 0x17c   : > { %s1397_s21 = scalar_lea.sflag [#allocation3], %s1396_s18 }
 0x17d   : > { %p1782_p3 = pnand %p1785_p2, %p2036_p8 }
 0x17f   : > { %1939 = dma.done.wait (!%p1782_p3), %s1397_s21, 1024  }
 0x180   : > { %1941 = vsyncadd (!%p1782_p3), %s1397_s21, 4294966272  ;;  %s16_s17 = sadd.s32 1, %s1964_s17   ;;  %s2430_s12 = smov %s1948_s13 }
 0x181   : > { %p13_p5 = scmp.ge.s32.totalorder %s16_s17, 4   ;;  %s2431_s13 = smov %s1952_s14 }
 0x182   : > { %s2432_s14 = smov %s2042_s25  ;;  %s2433_s15 = smov %s1960_s16 }
 0x183   : > { %s2434_s16 = smov %s2436_s20  ;;  %15 = sbr.rel (!%p13_p5) target bundleno = 4 (0x4), region = 76 }
 0x18a   :  { %1402 = vsyncpa [#allocation3], 1 }
 0x18b   :  { %1404 = vsyncpa [#allocation3 + $0x1], 1 }

</bundles_post_ra>
